<compile_context>
chip_gen: v7x
topology: tpu7x:2x2x1
jax: 0.10.0
libtpu: 0.0.40
codegen_flags: <defaults>
</compile_context>

<pallas_src>
import jax
import jax.numpy as jnp
from jax.experimental import pallas as pl
from jax.experimental.pallas import tpu as pltpu

DIMS = [51, 500, 150, 20, 2]          # original feature sizes
PAD_DIMS = [64, 512, 256, 128, 128]   # lane/sublane friendly padded sizes


def _round_up(x, m):
    return ((x + m - 1) // m) * m


def linearnet_kernel(x_ref,
                     w1_ref, b1_ref,
                     w2_ref, b2_ref,
                     w3_ref, b3_ref,
                     w4_ref, b4_ref,
                     o_ref):
    # layer 1: linear -> relu            (BN1 folded into W2/b2)
    h = jnp.dot(x_ref[...], w1_ref[...], preferred_element_type=jnp.float32)
    h = jnp.maximum(h + b1_ref[...], 0.0)

    # layer 2: linear -> relu -> dropout (eval: identity); BN2 folded into W3/b3
    # TODO(synk): training-mode Dropout(p=0.2) omitted (eval-mode identity).
    h = jnp.dot(h.astype(jnp.bfloat16), w2_ref[...],
                preferred_element_type=jnp.float32)
    h = jnp.maximum(h + b2_ref[...], 0.0)

    # layer 3: linear -> relu            (BN3 folded into W4/b4)
    h = jnp.dot(h.astype(jnp.bfloat16), w3_ref[...],
                preferred_element_type=jnp.float32)
    h = jnp.maximum(h + b3_ref[...], 0.0)

    # layer 4: final linear (lane-dense 128-wide store; real cols are [:2])
    o_ref[...] = jnp.dot(h.astype(jnp.bfloat16), w4_ref[...],
                         preferred_element_type=jnp.float32) + b4_ref[...]


def linearnet_forward(x, params, tb=512):
    """x: (B, 51) f32. params: padded/folded [w1,b1,w2,b2,w3,b3,w4,b4]."""
    B, F = x.shape
    assert F == DIMS[0]

    # Batch tile: divisible by 8 (sublanes); cap at tb, round batch up to it.
    TB = min(tb, _round_up(B, 8))
    B_pad = _round_up(B, TB)

    # Pad input to (B_pad, 64) and cast the matmul operand to bf16.
    xp = jnp.pad(x.astype(jnp.bfloat16),
                 ((0, B_pad - B), (0, PAD_DIMS[0] - F)))

    grid = (B_pad // TB,)

    x_spec = pl.BlockSpec((TB, PAD_DIMS[0]), lambda i: (i, 0))
    # Weights/biases: full-array blocks, constant index_map -> VMEM resident.
    param_specs = [pl.BlockSpec(p.shape, lambda i: (0, 0)) for p in params]
    out_spec = pl.BlockSpec((TB, PAD_DIMS[4]), lambda i: (i, 0))

    flops = 2 * B_pad * sum(PAD_DIMS[k] * PAD_DIMS[k + 1] for k in range(4))
    bytes_accessed = (xp.size * xp.dtype.itemsize
                      + sum(int(p.size) * p.dtype.itemsize for p in params)
                      + B_pad * PAD_DIMS[4] * 4)

    out = pl.pallas_call(
        linearnet_kernel,
        out_shape=jax.ShapeDtypeStruct((B_pad, PAD_DIMS[4]), jnp.float32),
        grid=grid,
        in_specs=[x_spec] + param_specs,
        out_specs=out_spec,
        compiler_params=pltpu.CompilerParams(
            dimension_semantics=("parallel",)),
        cost_estimate=pl.CostEstimate(flops=flops, transcendentals=0,
                                      bytes_accessed=bytes_accessed),
    )(xp, *params)

    # Strip batch padding and the zero-padded output columns.
    return out[:B, :DIMS[4]]


def init_params(key):
    """Deterministic init matching the PyTorch module (eval mode).

    Returns:
      kernel_params: BN-folded, zero-padded, bf16-weight params for the kernel.
      ref_params:    original-shape f32 (Ws, Bs, scales, shifts) for a JAX ref.
    """
    eps = 1e-5
    keys = jax.random.split(key, 16)
    ki = 0
    Ws, Bs, scales, shifts = [], [], [], []
    for li in range(4):
        fan_in, fan_out = DIMS[li], DIMS[li + 1]
        bound = 1.0 / jnp.sqrt(jnp.float32(fan_in))
        w = jax.random.uniform(keys[ki], (fan_in, fan_out), jnp.float32,
                               -bound, bound); ki += 1
        b = jax.random.uniform(keys[ki], (fan_out,), jnp.float32,
                               -bound, bound); ki += 1
        Ws.append(w)
        Bs.append(b)
        if li < 3:  # BatchNorm1d after layers 1-3 (eval: running stats)
            gamma = 1.0 + 0.1 * jax.random.normal(keys[ki], (fan_out,),
                                                  jnp.float32); ki += 1
            beta = 0.1 * jax.random.normal(keys[ki], (fan_out,),
                                           jnp.float32); ki += 1
            running_mean = 0.05 * jnp.arange(fan_out, dtype=jnp.float32)
            running_var = (jnp.ones((fan_out,), jnp.float32)
                           + 0.01 * jnp.arange(fan_out, dtype=jnp.float32))
            scale = gamma / jnp.sqrt(running_var + eps)
            shift = beta - running_mean * scale
            scales.append(scale)
            shifts.append(shift)

    ref_params = ([w for w in Ws], [b for b in Bs],
                  list(scales), list(shifts))

    # Fold BN_i (h*s + t) into layer i+1:  (h*s + t) @ W + b
    #   = h @ (diag(s) @ W) + (t @ W + b)
    fWs = [w for w in Ws]
    fBs = [b for b in Bs]
    for li in range(1, 4):
        s, t = scales[li - 1], shifts[li - 1]
        fBs[li] = fBs[li] + t @ fWs[li]          # use original W for t @ W
        fWs[li] = s[:, None] * fWs[li]

    # Zero-pad to lane-friendly shapes; weights -> bf16, biases stay f32.
    kernel_params = []
    for li in range(4):
        in_p, out_p = PAD_DIMS[li], PAD_DIMS[li + 1]
        w = jnp.zeros((in_p, out_p), jnp.float32)
        w = w.at[:DIMS[li], :DIMS[li + 1]].set(fWs[li])
        b = jnp.zeros((1, out_p), jnp.float32)
        b = b.at[0, :DIMS[li + 1]].set(fBs[li])
        kernel_params.append(w.astype(jnp.bfloat16))
        kernel_params.append(b)
    return kernel_params, ref_params


def reference_forward(x, ref_params):
    """Pure-JAX f32 reference with explicit (unfolded) eval-mode BN."""
    Ws, Bs, scales, shifts = ref_params
    h = jnp.maximum(x @ Ws[0] + Bs[0], 0.0)
    h = h * scales[0] + shifts[0]
    h = jnp.maximum(h @ Ws[1] + Bs[1], 0.0)   # Dropout eval = identity
    h = h * scales[1] + shifts[1]
    h = jnp.maximum(h @ Ws[2] + Bs[2], 0.0)
    h = h * scales[2] + shifts[2]
    return h @ Ws[3] + Bs[3]


if __name__ == "__main__":
    key = jax.random.PRNGKey(0)
    k_x, k_p = jax.random.split(key)
    batch = 8
    x = jax.random.normal(k_x, (batch, DIMS[0]), jnp.float32)

    kernel_params, ref_params = init_params(k_p)

    out = linearnet_forward(x, kernel_params)
    out = jax.block_until_ready(out)
    assert out.shape == (batch, 2) and out.dtype == jnp.float32
    assert bool(jnp.all(jnp.isfinite(out)))

    # Tolerance check vs f32 reference (bf16 matmul operands + BN fold rounding).
    ref = reference_forward(x, ref_params)
    err = float(jnp.max(jnp.abs(out - ref)))
    tol = 0.05 * (1.0 + float(jnp.max(jnp.abs(ref))))
    assert err < tol, f"max abs err {err} exceeds tol {tol}"

    print("KERNEL_OK")
</pallas_src>

<mosaic_0001>
module attributes {stable_mosaic.version = 11 : i64} {
  func.func @linearnet_kernel(%arg0: i32, %arg1: memref<8x64xbf16, #tpu.memory_space<vmem>>, %arg2: memref<64x512xbf16, #tpu.memory_space<vmem>>, %arg3: memref<1x512xf32, #tpu.memory_space<vmem>>, %arg4: memref<512x256xbf16, #tpu.memory_space<vmem>>, %arg5: memref<1x256xf32, #tpu.memory_space<vmem>>, %arg6: memref<256x128xbf16, #tpu.memory_space<vmem>>, %arg7: memref<1x128xf32, #tpu.memory_space<vmem>>, %arg8: memref<128x128xbf16, #tpu.memory_space<vmem>>, %arg9: memref<1x128xf32, #tpu.memory_space<vmem>>, %arg10: memref<8x128xf32, #tpu.memory_space<vmem>>) attributes {dimension_semantics = [#tpu.dimension_semantics<parallel>], iteration_bounds = array<i64: 1>, scalar_prefetch = 0 : i64, scratch_operands = 0 : i64, tpu.core_type = #tpu.core_type<tc>, window_params = [{transform_indices = @transform_0, window_bounds = array<i64: 8, 64>}, {pipeline_mode = #tpu.pipeline_mode<synchronous>, transform_indices = @transform_1, window_bounds = array<i64: 64, 512>}, {pipeline_mode = #tpu.pipeline_mode<synchronous>, transform_indices = @transform_2, window_bounds = array<i64: 1, 512>}, {pipeline_mode = #tpu.pipeline_mode<synchronous>, transform_indices = @transform_3, window_bounds = array<i64: 512, 256>}, {pipeline_mode = #tpu.pipeline_mode<synchronous>, transform_indices = @transform_4, window_bounds = array<i64: 1, 256>}, {pipeline_mode = #tpu.pipeline_mode<synchronous>, transform_indices = @transform_5, window_bounds = array<i64: 256, 128>}, {pipeline_mode = #tpu.pipeline_mode<synchronous>, transform_indices = @transform_6, window_bounds = array<i64: 1, 128>}, {pipeline_mode = #tpu.pipeline_mode<synchronous>, transform_indices = @transform_7, window_bounds = array<i64: 128, 128>}, {pipeline_mode = #tpu.pipeline_mode<synchronous>, transform_indices = @transform_8, window_bounds = array<i64: 1, 128>}, {transform_indices = @transform_9, window_bounds = array<i64: 8, 128>}]} {
    %c0 = arith.constant 0 : index
    %c0_0 = arith.constant 0 : index
    %0 = vector.load %arg1[%c0, %c0_0] : memref<8x64xbf16, #tpu.memory_space<vmem>>, vector<8x64xbf16>
    %c0_1 = arith.constant 0 : index
    %c0_2 = arith.constant 0 : index
    %1 = vector.load %arg2[%c0_1, %c0_2] : memref<64x512xbf16, #tpu.memory_space<vmem>>, vector<64x512xbf16>
    %cst = arith.constant dense<0.000000e+00> : vector<8x512xf32>
    %2 = tpu.matmul %0, %1, %cst {dimension_numbers = #tpu.dot_dimension_numbers<[1], [0], [0], [1], [0, 0, 1, 1], [], []>} : vector<8x64xbf16>, vector<64x512xbf16>, vector<8x512xf32> -> vector<8x512xf32>
    %c0_3 = arith.constant 0 : index
    %c0_4 = arith.constant 0 : index
    %3 = vector.load %arg3[%c0_3, %c0_4] : memref<1x512xf32, #tpu.memory_space<vmem>>, vector<1x512xf32>
    %4 = vector.broadcast %3 : vector<1x512xf32> to vector<8x512xf32>
    %5 = arith.addf %2, %4 : vector<8x512xf32>
    %cst_5 = arith.constant 0.000000e+00 : f32
    %6 = vector.broadcast %cst_5 : f32 to vector<8x512xf32>
    %7 = arith.maximumf %5, %6 : vector<8x512xf32>
    %8 = arith.truncf %7 : vector<8x512xf32> to vector<8x512xbf16>
    %c0_6 = arith.constant 0 : index
    %c0_7 = arith.constant 0 : index
    %9 = vector.load %arg4[%c0_6, %c0_7] : memref<512x256xbf16, #tpu.memory_space<vmem>>, vector<512x256xbf16>
    %cst_8 = arith.constant dense<0.000000e+00> : vector<8x256xf32>
    %10 = tpu.matmul %8, %9, %cst_8 {dimension_numbers = #tpu.dot_dimension_numbers<[1], [0], [0], [1], [0, 0, 1, 1], [], []>} : vector<8x512xbf16>, vector<512x256xbf16>, vector<8x256xf32> -> vector<8x256xf32>
    %c0_9 = arith.constant 0 : index
    %c0_10 = arith.constant 0 : index
    %11 = vector.load %arg5[%c0_9, %c0_10] : memref<1x256xf32, #tpu.memory_space<vmem>>, vector<1x256xf32>
    %12 = vector.broadcast %11 : vector<1x256xf32> to vector<8x256xf32>
    %13 = arith.addf %10, %12 : vector<8x256xf32>
    %cst_11 = arith.constant 0.000000e+00 : f32
    %14 = vector.broadcast %cst_11 : f32 to vector<8x256xf32>
    %15 = arith.maximumf %13, %14 : vector<8x256xf32>
    %16 = arith.truncf %15 : vector<8x256xf32> to vector<8x256xbf16>
    %c0_12 = arith.constant 0 : index
    %c0_13 = arith.constant 0 : index
    %17 = vector.load %arg6[%c0_12, %c0_13] : memref<256x128xbf16, #tpu.memory_space<vmem>>, vector<256x128xbf16>
    %cst_14 = arith.constant dense<0.000000e+00> : vector<8x128xf32>
    %18 = tpu.matmul %16, %17, %cst_14 {dimension_numbers = #tpu.dot_dimension_numbers<[1], [0], [0], [1], [0, 0, 1, 1], [], []>} : vector<8x256xbf16>, vector<256x128xbf16>, vector<8x128xf32> -> vector<8x128xf32>
    %c0_15 = arith.constant 0 : index
    %c0_16 = arith.constant 0 : index
    %19 = vector.load %arg7[%c0_15, %c0_16] : memref<1x128xf32, #tpu.memory_space<vmem>>, vector<1x128xf32>
    %20 = vector.broadcast %19 : vector<1x128xf32> to vector<8x128xf32>
    %21 = arith.addf %18, %20 : vector<8x128xf32>
    %cst_17 = arith.constant 0.000000e+00 : f32
    %22 = vector.broadcast %cst_17 : f32 to vector<8x128xf32>
    %23 = arith.maximumf %21, %22 : vector<8x128xf32>
    %24 = arith.truncf %23 : vector<8x128xf32> to vector<8x128xbf16>
    %c0_18 = arith.constant 0 : index
    %c0_19 = arith.constant 0 : index
    %25 = vector.load %arg8[%c0_18, %c0_19] : memref<128x128xbf16, #tpu.memory_space<vmem>>, vector<128x128xbf16>
    %cst_20 = arith.constant dense<0.000000e+00> : vector<8x128xf32>
    %26 = tpu.matmul %24, %25, %cst_20 {dimension_numbers = #tpu.dot_dimension_numbers<[1], [0], [0], [1], [0, 0, 1, 1], [], []>} : vector<8x128xbf16>, vector<128x128xbf16>, vector<8x128xf32> -> vector<8x128xf32>
    %c0_21 = arith.constant 0 : index
    %c0_22 = arith.constant 0 : index
    %27 = vector.load %arg9[%c0_21, %c0_22] : memref<1x128xf32, #tpu.memory_space<vmem>>, vector<1x128xf32>
    %28 = vector.broadcast %27 : vector<1x128xf32> to vector<8x128xf32>
    %29 = arith.addf %26, %28 : vector<8x128xf32>
    %c0_23 = arith.constant 0 : index
    %c0_24 = arith.constant 0 : index
    %30 = vector.load %arg10[%c0_23, %c0_24] : memref<8x128xf32, #tpu.memory_space<vmem>>, vector<8x128xf32>
    tpu.vector_store %arg10[%c0_23, %c0_24], %29 {strides = array<i32>} : memref<8x128xf32, #tpu.memory_space<vmem>>, vector<8x128xf32>,
    return
  }
  func.func @transform_0(%arg0: i32) -> (i32, i32) {
    %c0_i32 = arith.constant 0 : i32
    %c0_i32_0 = arith.constant 0 : i32
    return %arg0, %c0_i32 : i32, i32
  }
  func.func @transform_1(%arg0: i32) -> (i32, i32) {
    %c0_i32 = arith.constant 0 : i32
    %c0_i32_0 = arith.constant 0 : i32
    %c0_i32_1 = arith.constant 0 : i32
    return %c0_i32, %c0_i32_0 : i32, i32
  }
  func.func @transform_2(%arg0: i32) -> (i32, i32) {
    %c0_i32 = arith.constant 0 : i32
    %c0_i32_0 = arith.constant 0 : i32
    %c0_i32_1 = arith.constant 0 : i32
    return %c0_i32, %c0_i32_0 : i32, i32
  }
  func.func @transform_3(%arg0: i32) -> (i32, i32) {
    %c0_i32 = arith.constant 0 : i32
    %c0_i32_0 = arith.constant 0 : i32
    %c0_i32_1 = arith.constant 0 : i32
    return %c0_i32, %c0_i32_0 : i32, i32
  }
  func.func @transform_4(%arg0: i32) -> (i32, i32) {
    %c0_i32 = arith.constant 0 : i32
    %c0_i32_0 = arith.constant 0 : i32
    %c0_i32_1 = arith.constant 0 : i32
    return %c0_i32, %c0_i32_0 : i32, i32
  }
  func.func @transform_5(%arg0: i32) -> (i32, i32) {
    %c0_i32 = arith.constant 0 : i32
    %c0_i32_0 = arith.constant 0 : i32
    %c0_i32_1 = arith.constant 0 : i32
    return %c0_i32, %c0_i32_0 : i32, i32
  }
  func.func @transform_6(%arg0: i32) -> (i32, i32) {
    %c0_i32 = arith.constant 0 : i32
    %c0_i32_0 = arith.constant 0 : i32
    %c0_i32_1 = arith.constant 0 : i32
    return %c0_i32, %c0_i32_0 : i32, i32
  }
  func.func @transform_7(%arg0: i32) -> (i32, i32) {
    %c0_i32 = arith.constant 0 : i32
    %c0_i32_0 = arith.constant 0 : i32
    %c0_i32_1 = arith.constant 0 : i32
    return %c0_i32, %c0_i32_0 : i32, i32
  }
  func.func @transform_8(%arg0: i32) -> (i32, i32) {
    %c0_i32 = arith.constant 0 : i32
    %c0_i32_0 = arith.constant 0 : i32
    %c0_i32_1 = arith.constant 0 : i32
    return %c0_i32, %c0_i32_0 : i32, i32
  }
  func.func @transform_9(%arg0: i32) -> (i32, i32) {
    %c0_i32 = arith.constant 0 : i32
    %c0_i32_0 = arith.constant 0 : i32
    return %arg0, %c0_i32 : i32, i32
  }
}

</mosaic_0001>

<bundles_post_ra>
// kernel: tpu_custom_call.1
= control target key start
LH: loop header
LB: loop body
LE: loop exit
PB: predicated region body
PF: predicated region fallthrough
CT: control target
= control target key end

     0   :  { %14 = vsyncpa [#allocation3], 0  ;;  %s1749_s0 = inlined_call_operand.hbm [shape: bf16[8,64], index: 0, kind: input, shape index: {}]   ;;  %s1750_s1 = inlined_call_operand.hbm [shape: bf16[64,512], index: 1, kind: input, shape index: {}]   ;;  %s1751_s2 = inlined_call_operand.vmem [shape: f32[1,512], index: 2, kind: input, shape index: {}]   ;;  %s1752_s3 = inlined_call_operand.hbm [shape: bf16[512,256], index: 3, kind: input, shape index: {}]   ;;  %s1753_s4 = inlined_call_operand.vmem [shape: f32[1,256], index: 4, kind: input, shape index: {}]   ;;  %s1754_s5 = inlined_call_operand.hbm [shape: bf16[256,128], index: 5, kind: input, shape index: {}]   ;;  %s1755_s6 = inlined_call_operand.vmem [shape: f32[1,128], index: 6, kind: input, shape index: {}]   ;;  %s1756_s7 = inlined_call_operand.hbm [shape: bf16[128,128], index: 7, kind: input, shape index: {}]   ;;  %s1757_s8 = inlined_call_operand.vmem [shape: f32[1,128], index: 8, kind: input, shape index: {}]   ;;  %s1758_s9 = inlined_call_operand.hbm [shape: f32[8,128], index: 9, kind: output, shape index: {}]  }
   0x1   :  { %15 = vsyncpa [#allocation6], 0 }
   0x2   :  { %16 = vsyncpa [#allocation9], 0 }
   0x3   :  { %17 = vsyncpa [#allocation4], 0  ;;  %s1565_s30 = smov [#allocation5]   ;;  %s1425_s13 = scalar_lea.hbm %s1750_s1, 2048 }
   0x4   :  { %s33_s10 = sshll.u32 %s1565_s30, 4  ;;  %p1426_p0 = scmp.ne.s32.totalorder %s1750_s1, %s1425_s13  ;;  %s34_s10 = int_to_ptr.vmem [resolvable:$true] %s33_s10 }
   0x5   :  { %p1429_p1 = scmp.lt.u32.totalorder %s1425_s13, %s1750_s1 }
   0x7   :  { %p1431_p2 = pnand %p1429_p1, %p1426_p0 }
   0x9   :  { %1434 = shalt.err (!%p1431_p2)
}
   0xa   :  { %s1435_s18 = scalar_lea.vmem %s34_s10, 2048  ;;  %p1440_p4 = scmp.lt.s32.totalorder %s34_s10, %s34_s10 }
   0xb   :  { %p1436_p3 = scmp.ne.s32.totalorder %s34_s10, %s1435_s18  ;;  %p1441_p5 = scmp.lt.s32.totalorder %s1435_s18, %s1435_s18 }
   0xd   :  { %p1442_p6 = por %p1441_p5, %p1440_p4 }
   0xf   :  { %p1443_p7 = pnand %p1442_p6, %p1436_p3 }
  0x11   :  { %1446 = shalt.err (!%p1443_p7)
}
  0x12   :  { %s1566_s19 = smov 256   ;;  %s1567_s20 = smov 16  }
  0x13   :  { %39 = dma.hbm_to_vmem [thread:$0]  %s1750_s1, 2048, %s34_s10, [#allocation6], %s1566_s19, %s1566_s19, %s1567_s20  }
  0x14   :  { %s1568_s23 = smov [#allocation8]   ;;  %s1447_s27 = scalar_lea.hbm %s1754_s5, 2048 }
  0x15   :  { %s61_s24 = sshll.u32 %s1568_s23, 4  ;;  %p1448_p8 = scmp.ne.s32.totalorder %s1754_s5, %s1447_s27  ;;  %s62_s24 = int_to_ptr.vmem [resolvable:$true] %s61_s24 }
  0x16   :  { %p1451_p9 = scmp.lt.u32.totalorder %s1447_s27, %s1754_s5 }
  0x18   :  { %p1453_p10 = pnand %p1451_p9, %p1448_p8 }
  0x1a   :  { %1456 = shalt.err (!%p1453_p10)
}
  0x1b   :  { %s1457_s12 = scalar_lea.vmem %s62_s24, 2048  ;;  %p1462_p12 = scmp.lt.s32.totalorder %s62_s24, %s62_s24 }
  0x1c   :  { %p1458_p11 = scmp.ne.s32.totalorder %s62_s24, %s1457_s12  ;;  %p1463_p13 = scmp.lt.s32.totalorder %s1457_s12, %s1457_s12 }
  0x1e   :  { %p1464_p0 = por %p1463_p13, %p1462_p12 }
  0x20   :  { %p1465_p1 = pnand %p1464_p0, %p1458_p11 }
  0x22   :  { %1468 = shalt.err (!%p1465_p1)
}
  0x23   :  { %s1569_s1 = smov 64   ;;  %s1570_s10 = smov 4  }
  0x24   :  { %67 = dma.hbm_to_vmem [thread:$0]  %s1754_s5, 2048, %s62_s24, [#allocation9], %s1569_s1, %s1569_s1, %s1570_s10  }
  0x25   :  { %s1571_s15 = smov [#allocation2]   ;;  %s1572_s17 = smov [#allocation7]  }
  0x26   :  { %s24_s16 = sshll.u32 %s1571_s15, 4  ;;  %s47_s18 = sshll.u32 %s1572_s17, 4  ;;  %s25_s16 = int_to_ptr.vmem [resolvable:$true] %s24_s16  ;;  %s1657_s18 = int_to_ptr.vmem [resolvable:$true] %s47_s18 }
  0x27   :  { %s1469_s21 = scalar_lea.hbm %s1749_s0, 64 }
  0x28   :  { %p1470_p2 = scmp.ne.s32.totalorder %s1749_s0, %s1469_s21  ;;  %p1473_p3 = scmp.lt.u32.totalorder %s1469_s21, %s1749_s0 }
  0x2a   :  { %p1475_p4 = pnand %p1473_p3, %p1470_p2 }
  0x2c   :  { %1478 = shalt.err (!%p1475_p4)
}
  0x2d   :  { %s1479_s5 = scalar_lea.vmem %s25_s16, 64  ;;  %p1484_p6 = scmp.lt.s32.totalorder %s25_s16, %s25_s16 }
  0x2e   :  { %p1480_p5 = scmp.ne.s32.totalorder %s25_s16, %s1479_s5  ;;  %p1485_p7 = scmp.lt.s32.totalorder %s1479_s5, %s1479_s5 }
  0x30   :  { %p1486_p8 = por %p1485_p7, %p1484_p6 }
  0x32   :  { %p1487_p9 = pnand %p1486_p8, %p1480_p5 }
  0x34   :  { %1490 = shalt.err (!%p1487_p9)
}
  0x35   :  { %27 = dma.hbm_to_vmem [thread:$0]  %s1749_s0, 64, %s25_s16, [#allocation3]  }
  0x36   :  { %s1491_s30 = scalar_lea.hbm %s1752_s3, 8192 }
  0x37   :  { %p1492_p10 = scmp.ne.s32.totalorder %s1752_s3, %s1491_s30  ;;  %p1495_p11 = scmp.lt.u32.totalorder %s1491_s30, %s1752_s3 }
  0x39   :  { %p1497_p12 = pnand %p1495_p11, %p1492_p10 }
  0x3b   :  { %1500 = shalt.err (!%p1497_p12)
}
  0x3c   :  { %s1501_s15 = scalar_lea.vmem %s1657_s18, 8192  ;;  %p1506_p0 = scmp.lt.s32.totalorder %s1657_s18, %s1657_s18 }
  0x3d   :  { %p1502_p13 = scmp.ne.s32.totalorder %s1657_s18, %s1501_s15  ;;  %p1507_p1 = scmp.lt.s32.totalorder %s1501_s15, %s1501_s15 }
  0x3f   :  { %p1508_p2 = por %p1507_p1, %p1506_p0 }
  0x41   :  { %p1509_p3 = pnand %p1508_p2, %p1502_p13 }
  0x43   :  { %1512 = shalt.err (!%p1509_p3)
}
  0x44   :  { %s1573_s0 = smov 128   ;;  %s1574_s16 = smov 8  }
  0x45   :  { %53 = dma.hbm_to_vmem [thread:$0]  %s1752_s3, 8192, %s1657_s18, [#allocation6], %s1573_s0, %s1573_s0, %s1574_s16  }
  0x46   :  { %s1575_s20 = smov [#allocation10]   ;;  %s1513_s25 = scalar_lea.hbm %s1756_s7, 1024 }
  0x47   :  { %s75_s21 = sshll.u32 %s1575_s20, 4  ;;  %p1514_p4 = scmp.ne.s32.totalorder %s1756_s7, %s1513_s25  ;;  %s76_s21 = int_to_ptr.vmem [resolvable:$true] %s75_s21 }
  0x48   :  { %p1517_p5 = scmp.lt.u32.totalorder %s1513_s25, %s1756_s7 }
  0x4a   :  { %p1519_p6 = pnand %p1517_p5, %p1514_p4 }
  0x4c   :  { %1522 = shalt.err (!%p1519_p6)
}
  0x4d   :  { %s1523_s28 = scalar_lea.vmem %s76_s21, 1024  ;;  %p1528_p8 = scmp.lt.s32.totalorder %s76_s21, %s76_s21 }
  0x4e   :  { %p1524_p7 = scmp.ne.s32.totalorder %s76_s21, %s1523_s28  ;;  %p1529_p9 = scmp.lt.s32.totalorder %s1523_s28, %s1523_s28 }
  0x50   :  { %p1530_p10 = por %p1529_p9, %p1528_p8 }
  0x52   :  { %p1531_p11 = pnand %p1530_p10, %p1524_p7 }
  0x54   :  { %1534 = shalt.err (!%p1531_p11)
}
  0x55   :  { %81 = dma.hbm_to_vmem [thread:$0]  %s1756_s7, 1024, %s76_s21, [#allocation9], %s1569_s1, %s1569_s1, %s1570_s10  }
  0x56   :  { %1557 = dma.done.wait [#allocation3], 64  }
  0x57   :  { %1558 = vsyncadd [#allocation3], 4294967232 }
  0x58   :  { %1559 = dma.done.wait [#allocation6], 10240  }
  0x59   :  { %1560 = vsyncadd [#allocation6], 4294957056 }
  0x5a   :  { %1561 = dma.done.wait [#allocation9], 3072  }
  0x5b   :  { %1562 = vsyncadd [#allocation9], 4294964224  ;;  %v1576_v0 = vmov 0   ;;  %v1281_v1 = vld [vmem:[#allocation5 + $0x4] ss:$16 sps:$4 sm:$0xff]   ;;  %vm219_vm0 = vcmask 523264   ;;  %v119_v63 = vlaneseq }
  0x5c   :  { %255 = vmatprep.mubr.bf16.mxu1 %v1576_v0  ;;  %v1283_v2 = vld [vmem:[#allocation5] ss:$16 sps:$4 sm:$0xff]   ;;  %223 = vmatprep.subr.bf16.mxu1 %v1281_v1  ;;  %v1284_v3 = vld [vmem:[#allocation5 + $0x24] ss:$16 sps:$4 sm:$0xff]   ;;  %v1295_v9 = vld [vmem:[#allocation5 + $0xc] ss:$16 sps:$4 sm:$0xff]  }
  0x5d   :  { %224 = vmatpush1.bf16.msra.mxu1 %v1283_v2  ;;  %v1286_v4 = vld [vmem:[#allocation5 + $0x20] ss:$16 sps:$4 sm:$0xff]   ;;  %v1287_v5 = vld [vmem:[#allocation5 + $0x44] ss:$16 sps:$4 sm:$0xff]   ;;  %v100_v12 = vld [vmem:[#allocation2] sm:$0xf] }
  0x5e   :  { %225 = vmatprep.subr.bf16.mxu1 %v1284_v3  ;;  %v1289_v6 = vld [vmem:[#allocation5 + $0x40] ss:$16 sps:$4 sm:$0xff]   ;;  %v1290_v7 = vld [vmem:[#allocation5 + $0x64] ss:$16 sps:$4 sm:$0xff]   ;;  %v1293_v14 = vld [vmem:[#allocation5 + $0x8] ss:$16 sps:$4 sm:$0xff]  }
  0x5f   :  { %v1292_v8 = vld [vmem:[#allocation5 + $0x60] ss:$16 sps:$4 sm:$0xff]   ;;  %v1305_v10 = vld [vmem:[#allocation7 + $0x4] ss:$8 sps:$4 sm:$0xff]   ;;  %v1308_v13 = vld [vmem:[#allocation7 + $0x14] ss:$8 sps:$4 sm:$0xff]  }
  0x60   :  { %v1307_v11 = vld [vmem:[#allocation7] ss:$8 sps:$4 sm:$0xff]   ;;  %709 = vmatprep.subr.bf16.mxu0 %v1305_v10  ;;  %v1310_v15 = vld [vmem:[#allocation7 + $0x10] ss:$8 sps:$4 sm:$0xff]   ;;  %v1298_v16 = vld [vmem:[#allocation5 + $0x2c] ss:$16 sps:$4 sm:$0xff]  }
  0x61   :  { %226 = vmatpush1.bf16.msra.mxu1 %v1286_v4  ;;  %710 = vmatpush1.bf16.msra.mxu0 %v1307_v11  ;;  %v1311_v17 = vld [vmem:[#allocation7 + $0x24] ss:$8 sps:$4 sm:$0xff]   ;;  %v1296_v18 = vld [vmem:[#allocation5 + $0x28] ss:$16 sps:$4 sm:$0xff]   ;;  %v1314_v20 = vld [vmem:[#allocation7 + $0x34] ss:$8 sps:$4 sm:$0xff]  }
  0x62   :  { %227 = vmatprep.subr.bf16.mxu1 %v1287_v5  ;;  %711 = vmatprep.subr.bf16.mxu0 %v1308_v13  ;;  %v1313_v19 = vld [vmem:[#allocation7 + $0x20] ss:$8 sps:$4 sm:$0xff]   ;;  %v1301_v21 = vld [vmem:[#allocation5 + $0x4c] ss:$16 sps:$4 sm:$0xff]   ;;  %v1316_v23 = vld [vmem:[#allocation7 + $0x30] ss:$8 sps:$4 sm:$0xff]  }
  0x63   :  { %v1299_v22 = vld [vmem:[#allocation5 + $0x48] ss:$16 sps:$4 sm:$0xff]   ;;  %v1317_v24 = vld [vmem:[#allocation7 + $0x44] ss:$8 sps:$4 sm:$0xff]   ;;  %v1320_v28 = vld [vmem:[#allocation7 + $0x54] ss:$8 sps:$4 sm:$0xff]  }
  0x64   :  { %v1304_v25 = vld [vmem:[#allocation5 + $0x6c] ss:$16 sps:$4 sm:$0xff]   ;;  %v1302_v26 = vld [vmem:[#allocation5 + $0x68] ss:$16 sps:$4 sm:$0xff]   ;;  %v1401_v51 = vld [vmem:[#allocation8 + $0x40] sm:$0xff]   ;;  %vm1578_vm1 = vmmov 0  }
  0x65   :  { %228 = vmatpush1.bf16.msra.mxu1 %v1289_v6  ;;  %712 = vmatpush1.bf16.msra.mxu0 %v1310_v15  ;;  %v1319_v27 = vld [vmem:[#allocation7 + $0x40] ss:$8 sps:$4 sm:$0xff]   ;;  %v1322_v29 = vld [vmem:[#allocation7 + $0x50] ss:$8 sps:$4 sm:$0xff]   ;;  %v1323_v30 = vld [vmem:[#allocation7 + $0x64] ss:$8 sps:$4 sm:$0xff]  }
  0x66   :  { %229 = vmatprep.subr.bf16.mxu1 %v1290_v7  ;;  %713 = vmatprep.subr.bf16.mxu0 %v1311_v17  ;;  %v1325_v31 = vld [vmem:[#allocation7 + $0x60] ss:$8 sps:$4 sm:$0xff]   ;;  %v1326_v32 = vld [vmem:[#allocation7 + $0x74] ss:$8 sps:$4 sm:$0xff]   ;;  %v1328_v33 = vld [vmem:[#allocation7 + $0x70] ss:$8 sps:$4 sm:$0xff]  }
  0x67   :  { %v1329_v34 = vld [vmem:[#allocation7 + $0x84] ss:$8 sps:$4 sm:$0xff]   ;;  %v1331_v35 = vld [vmem:[#allocation7 + $0x80] ss:$8 sps:$4 sm:$0xff]   ;;  %v1332_v36 = vld [vmem:[#allocation7 + $0x94] ss:$8 sps:$4 sm:$0xff]  }
  0x68   :  { %v1334_v37 = vld [vmem:[#allocation7 + $0x90] ss:$8 sps:$4 sm:$0xff]   ;;  %v1335_v38 = vld [vmem:[#allocation7 + $0xa4] ss:$8 sps:$4 sm:$0xff]   ;;  %v1337_v39 = vld [vmem:[#allocation7 + $0xa0] ss:$8 sps:$4 sm:$0xff]  }
  0x69   :  { %230 = vmatpush1.bf16.msra.mxu1 %v1292_v8  ;;  %714 = vmatpush1.bf16.msra.mxu0 %v1313_v19  ;;  %v1338_v40 = vld [vmem:[#allocation7 + $0xb4] ss:$8 sps:$4 sm:$0xff]   ;;  %v1340_v41 = vld [vmem:[#allocation7 + $0xb0] ss:$8 sps:$4 sm:$0xff]   ;;  %v1341_v42 = vld [vmem:[#allocation7 + $0xc4] ss:$8 sps:$4 sm:$0xff]  }
  0x6a   :  { %264 = vmatprep.subr.bf16.mxu1 %v1295_v9  ;;  %715 = vmatprep.subr.bf16.mxu0 %v1314_v20  ;;  %v1343_v43 = vld [vmem:[#allocation7 + $0xc0] ss:$8 sps:$4 sm:$0xff]   ;;  %v1344_v44 = vld [vmem:[#allocation7 + $0xd4] ss:$8 sps:$4 sm:$0xff]   ;;  %v1346_v45 = vld [vmem:[#allocation7 + $0xd0] ss:$8 sps:$4 sm:$0xff]  }
  0x6b   :  { %v1347_v46 = vld [vmem:[#allocation7 + $0xe4] ss:$8 sps:$4 sm:$0xff]   ;;  %v1349_v47 = vld [vmem:[#allocation7 + $0xe0] ss:$8 sps:$4 sm:$0xff]   ;;  %v1350_v48 = vld [vmem:[#allocation7 + $0xf4] ss:$8 sps:$4 sm:$0xff]  }
  0x6c   :  { %1117 = vmatmul.mubr.msk.bf16.vlgmr.msra.gmra.mrb[0].mxu1 %vm219_vm0, %v100_v12  ;;  %v1352_v49 = vld [vmem:[#allocation7 + $0xf0] ss:$8 sps:$4 sm:$0xff]   ;;  %v1355_v50 = vld [vmem:[#allocation7 + $0x104] ss:$8 sps:$4 sm:$0xff]   ;;  %v1711_v2 = vld [vmem:[%s1751_s2] sm:$0xf] }
  0x6d   :  { %265 = vmatpush1.bf16.msra.mxu1 %v1293_v14  ;;  %296 = vmatprep.mubr.bf16.mxu1 %v1576_v0  ;;  %v1402_v52 = vld [vmem:[#allocation8] sm:$0xff]   ;;  %v1403_v53 = vld [vmem:[#allocation8 + $0x48] sm:$0xff]   ;;  %v1405_v55 = vld [vmem:[#allocation8 + $0x50] sm:$0xff]   ;;  %v1705_v0 = vshrl.u32 %v119_v63, 7  ;;  %s1579_s12 = smov [#allocation11]  }
  0x6e   :  { %266 = vmatprep.subr.bf16.mxu1 %v1298_v16  ;;  %716 = vmatpush1.bf16.msra.mxu0 %v1316_v23  ;;  %v1404_v54 = vld [vmem:[#allocation8 + $0x8] sm:$0xff]   ;;  %v1406_v56 = vld [vmem:[#allocation8 + $0x10] sm:$0xff]   ;;  %v1407_v57 = vld [vmem:[#allocation8 + $0x58] sm:$0xff]   ;;  %s1090_s13 = sshll.u32 %s1579_s12, 4  ;;  %s1091_s13 = int_to_ptr.vmem [resolvable:$true] %s1090_s13 }
  0x6f   :  { %717 = vmatprep.subr.bf16.mxu0 %v1317_v24  ;;  %v1408_v58 = vld [vmem:[#allocation8 + $0x18] sm:$0xff]   ;;  %v1409_v59 = vld [vmem:[#allocation8 + $0x60] sm:$0xff]   ;;  %v1411_v61 = vld [vmem:[#allocation8 + $0x68] sm:$0xff]   ;;  %v121_v1 = vsub.s32 0, %v1705_v0  ;;  %v125_v3 = vsub.s32 1, %v1705_v0  ;;  %v133_v19 = vsub.s32 3, %v1705_v0  ;;  %p1540_p13 = scmp.lt.s32.totalorder %s1091_s13, %s1091_s13 }
  0x70   :  { %v1410_v60 = vld [vmem:[#allocation8 + $0x20] sm:$0xff]   ;;  %v1412_v62 = vld [vmem:[#allocation8 + $0x28] sm:$0xff]   ;;  %v1358_v17 = vld [vmem:[#allocation7 + $0x114] ss:$8 sps:$4 sm:$0xff]  }
  0x71   :  { %267 = vmatpush1.bf16.msra.mxu1 %v1296_v18  ;;  %v122_v4 = vrot.slane %v1711_v2, %v121_v1  ;;  %v126_v5 = vrot.slane %v1711_v2, %v125_v3  ;;  %v1353_v15 = vld [vmem:[#allocation7 + $0x100] ss:$8 sps:$4 sm:$0xff]   ;;  %v1356_v18 = vld [vmem:[#allocation7 + $0x110] ss:$8 sps:$4 sm:$0xff]   ;;  %v1361_v20 = vld [vmem:[#allocation7 + $0x124] ss:$8 sps:$4 sm:$0xff]  }
  0x72   :  { %268 = vmatprep.subr.bf16.mxu1 %v1301_v21  ;;  %718 = vmatpush1.bf16.msra.mxu0 %v1319_v27  ;;  %v1359_v21 = vld [vmem:[#allocation7 + $0x120] ss:$8 sps:$4 sm:$0xff]   ;;  %v1364_v23 = vld [vmem:[#allocation7 + $0x134] ss:$8 sps:$4 sm:$0xff]  }
  0x73   :  { %719 = vmatprep.subr.bf16.mxu0 %v1320_v28  ;;  %v1415_v63 = vld [vmem:[#allocation8 + $0x78] sm:$0xff]  }
  0x75   :  { %269 = vmatpush1.bf16.msra.mxu1 %v1299_v22  ;;  %v134_v22 = vrot.slane %v1711_v2, %v133_v19  ;;  %v1418_v19 = vld [vmem:[#allocation10 + $0x8] sm:$0xff]  }
  0x76   :  { %270 = vmatprep.subr.bf16.mxu1 %v1304_v25  ;;  %720 = vmatpush1.bf16.msra.mxu0 %v1322_v29  ;;  %v1367_v29 = vld [vmem:[#allocation7 + $0x144] ss:$8 sps:$4 sm:$0xff]  }
  0x77   :  { %721 = vmatprep.subr.bf16.mxu0 %v1323_v30 }
  0x79   :  { %271 = vmatpush1.bf16.msra.mxu1 %v1302_v26  ;;  %v1362_v26 = vld [vmem:[#allocation7 + $0x130] ss:$8 sps:$4 sm:$0xff]  }
  0x7a   :  { %722 = vmatpush1.bf16.msra.mxu0 %v1325_v31  ;;  %1209 = vmatprep.subr.bf16.mxu1 %v1401_v51  ;;  %v1394_v51 = vld [vmem:[#allocation7 + $0x1d4] ss:$8 sps:$4 sm:$0xff]  }
  0x7b   :  { %723 = vmatprep.subr.bf16.mxu0 %v1326_v32  ;;  %v1365_v32 = vld [vmem:[#allocation7 + $0x140] ss:$8 sps:$4 sm:$0xff]  }
  0x7c   :  { %1118 = vmatmul.mubr.msk.bf16.vlgmr.msra.gmra.mrb[4].mxu1 %vm219_vm0, %v100_v12 }
  0x7d   :  { %1210 = vmatpush3.bf16.msra.mxu1 %v1402_v52  ;;  %v1392_v52 = vld [vmem:[#allocation7 + $0x1d0] ss:$8 sps:$4 sm:$0xff]  }
  0x7e   :  { %724 = vmatpush1.bf16.msra.mxu0 %v1328_v33  ;;  %1211 = vmatprep.subr.bf16.mxu1 %v1403_v53 }
  0x7f   :  { %725 = vmatprep.subr.bf16.mxu0 %v1329_v34  ;;  %v1370_v34 = vld [vmem:[#allocation7 + $0x154] ss:$8 sps:$4 sm:$0xff]  }
  0x81   :  { %1212 = vmatpush3.bf16.msra.mxu1 %v1404_v54  ;;  %v1397_v54 = vld [vmem:[#allocation7 + $0x1e4] ss:$8 sps:$4 sm:$0xff]  }
  0x82   :  { %726 = vmatpush1.bf16.msra.mxu0 %v1331_v35  ;;  %1213 = vmatprep.subr.bf16.mxu1 %v1405_v55  ;;  %v1368_v35 = vld [vmem:[#allocation7 + $0x150] ss:$8 sps:$4 sm:$0xff]   ;;  %v1395_v55 = vld [vmem:[#allocation7 + $0x1e0] ss:$8 sps:$4 sm:$0xff]  }
  0x83   :  { %727 = vmatprep.subr.bf16.mxu0 %v1332_v36  ;;  %v1373_v36 = vld [vmem:[#allocation7 + $0x164] ss:$8 sps:$4 sm:$0xff]  }
  0x85   :  { %1214 = vmatpush3.bf16.msra.mxu1 %v1406_v56 }
  0x86   :  { %728 = vmatpush1.bf16.msra.mxu0 %v1334_v37  ;;  %1215 = vmatprep.subr.bf16.mxu1 %v1407_v57  ;;  %v1371_v37 = vld [vmem:[#allocation7 + $0x160] ss:$8 sps:$4 sm:$0xff]   ;;  %v1400_v57 = vld [vmem:[#allocation7 + $0x1f4] ss:$8 sps:$4 sm:$0xff]  }
  0x87   :  { %729 = vmatprep.subr.bf16.mxu0 %v1335_v38  ;;  %v1376_v38 = vld [vmem:[#allocation7 + $0x174] ss:$8 sps:$4 sm:$0xff]  }
  0x89   :  { %1216 = vmatpush3.bf16.msra.mxu1 %v1408_v58  ;;  %v1398_v58 = vld [vmem:[#allocation7 + $0x1f0] ss:$8 sps:$4 sm:$0xff]  }
  0x8a   :  { %730 = vmatpush1.bf16.msra.mxu0 %v1337_v39  ;;  %1217 = vmatprep.subr.bf16.mxu1 %v1409_v59  ;;  %v1374_v39 = vld [vmem:[#allocation7 + $0x170] ss:$8 sps:$4 sm:$0xff]  }
  0x8b   :  { %731 = vmatprep.subr.bf16.mxu0 %v1338_v40  ;;  %v1379_v40 = vld [vmem:[#allocation7 + $0x184] ss:$8 sps:$4 sm:$0xff]  }
  0x8d   :  { %1218 = vmatpush3.bf16.msra.mxu1 %v1410_v60 }
  0x8e   :  { %732 = vmatpush1.bf16.msra.mxu0 %v1340_v41  ;;  %1219 = vmatprep.subr.bf16.mxu1 %v1411_v61  ;;  %v1377_v41 = vld [vmem:[#allocation7 + $0x180] ss:$8 sps:$4 sm:$0xff]   ;;  %v1413_v61 = vld [vmem:[#allocation8 + $0x70] sm:$0xff]  }
  0x8f   :  { %733 = vmatprep.subr.bf16.mxu0 %v1341_v42  ;;  %v1382_v42 = vld [vmem:[#allocation7 + $0x194] ss:$8 sps:$4 sm:$0xff]  }
  0x91   :  { %1220 = vmatpush3.bf16.msra.mxu1 %v1412_v62  ;;  %v1414_v62 = vld [vmem:[#allocation8 + $0x30] sm:$0xff]  }
  0x92   :  { %734 = vmatpush1.bf16.msra.mxu0 %v1343_v43  ;;  %v1380_v43 = vld [vmem:[#allocation7 + $0x190] ss:$8 sps:$4 sm:$0xff]   ;;  %1221 = vmatprep.subr.bf16.mxu1 %v1413_v61 }
  0x93   :  { %735 = vmatprep.subr.bf16.mxu0 %v1344_v44  ;;  %v1385_v44 = vld [vmem:[#allocation7 + $0x1a4] ss:$8 sps:$4 sm:$0xff]  }
  0x95   :  { %1222 = vmatpush3.bf16.msra.mxu1 %v1414_v62 }
  0x96   :  { %736 = vmatpush1.bf16.msra.mxu0 %v1346_v45  ;;  %v1383_v45 = vld [vmem:[#allocation7 + $0x1a0] ss:$8 sps:$4 sm:$0xff]   ;;  %1223 = vmatprep.subr.bf16.mxu1 %v1415_v63 }
  0x97   :  { %737 = vmatprep.subr.bf16.mxu0 %v1347_v46  ;;  %v1388_v46 = vld [vmem:[#allocation7 + $0x1b4] ss:$8 sps:$4 sm:$0xff]  }
  0x9a   :  { %738 = vmatpush1.bf16.msra.mxu0 %v1349_v47  ;;  %v1386_v47 = vld [vmem:[#allocation7 + $0x1b0] ss:$8 sps:$4 sm:$0xff]  }
  0x9b   :  { %739 = vmatprep.subr.bf16.mxu0 %v1350_v48  ;;  %v1391_v48 = vld [vmem:[#allocation7 + $0x1c4] ss:$8 sps:$4 sm:$0xff]  }
  0x9e   :  { %740 = vmatpush1.bf16.msra.mxu0 %v1352_v49  ;;  %v1389_v49 = vld [vmem:[#allocation7 + $0x1c0] ss:$8 sps:$4 sm:$0xff]  }
  0x9f   :  { %750 = vmatprep.subr.bf16.mxu0 %v1355_v50  ;;  %v129_v50 = vsub.s32 2, %v1705_v0  ;;  %v1420_v0 = vld [vmem:[#allocation10 + $0x18] sm:$0xff]  }
  0xa1   :  { %v130_v53 = vrot.slane %v1711_v2, %v129_v50  ;;  %v1416_v2 = vld [vmem:[#allocation8 + $0x38] sm:$0xff]  }
  0xa2   :  { %1224 = vmatpush3.bf16.msra.mxu1 %v1416_v2 }
 0x13f   :  { %v257_v6 = vpop.f32.mrb[0].mxu1 }
 0x140   :  { %v258_v7 = vadd.f32 %v257_v6, %v122_v4  ;;  %v259_v8 = vpop.f32.mrb[1].mxu1  ;;  %v1577_v4 = vmov 0.0  }
 0x141   :  { %v260_v9 = vadd.f32 %v259_v8, %v126_v5  ;;  %v261_v10 = vpop.f32.mrb[2].mxu1  ;;  %1240 = vmatprep.subr.bf16.mxu1 %v1577_v4  ;;  %v377_v5 = vld [vmem:[%s1753_s4] sm:$0x3] }
 0x142   :  { %v305_v11 = vmax.f32 %v258_v7, 0.0  ;;  %v262_v12 = vpop.f32.mrb[3].mxu1  ;;  %v382_v6 = vrot.slane %v377_v5, %v121_v1  ;;  %v386_v7 = vrot.slane %v377_v5, %v125_v3  ;;  %v1419_v1 = vld [vmem:[#allocation10 + $0x10] sm:$0xff]   ;;  %v1421_v3 = vld [vmem:[#allocation10 + $0x20] sm:$0xff]  }
 0x143   :  { %v306_v13 = vmax.f32 %v260_v9, 0.0 }
 0x144   :  { %v309_v16 = vpack.c.bf16 %v305_v11, %v305_v11 }
 0x145   :  { %v310_v14 = vpack.c.bf16 %v306_v13, %v306_v13 }
 0x147   :  { %741 = vmatprep.mubr.bf16.mxu0 %v310_v14 }
 0x148   :  { %742 = vmatmul.mubr.bf16.vlgmr.msra.gmra.mrb[0].mxu0 %v309_v16 }
 0x149   :  { %751 = vmatpush1.bf16.msra.mxu0 %v1353_v15 }
 0x14a   :  { %752 = vmatprep.subr.bf16.mxu0 %v1358_v17  ;;  %v1417_v17 = vld [vmem:[#allocation10] sm:$0xff]  }
 0x14d   :  { %753 = vmatpush1.bf16.msra.mxu0 %v1356_v18 }
 0x14e   :  { %754 = vmatprep.subr.bf16.mxu0 %v1361_v20  ;;  %v1422_v20 = vld [vmem:[#allocation10 + $0x28] sm:$0xff]  }
 0x14f   :  { %v298_v24 = vpop.f32.mrb[4].mxu1 }
 0x150   :  { %v300_v25 = vpop.f32.mrb[5].mxu1  ;;  %v299_v56 = vadd.f32 %v298_v24, %v130_v53  ;;  %v1183_v24 = vld [vmem:[%s1755_s6] ss:$0 sm:$0xff]  ;;  %s1535_s6 = scalar_lea.vmem %s1091_s13, 128 }
 0x151   :  { %755 = vmatpush1.bf16.msra.mxu0 %v1359_v21  ;;  %v301_v27 = vadd.f32 %v300_v25, %v134_v22  ;;  %v302_v28 = vpop.f32.mrb[6].mxu1  ;;  %v1423_v21 = vld [vmem:[#allocation10 + $0x30] sm:$0xff]   ;;  %v1424_v22 = vld [vmem:[#allocation10 + $0x38] sm:$0xff]   ;;  %p1536_p12 = scmp.ne.s32.totalorder %s1091_s13, %s1535_s6  ;;  %p1541_p0 = scmp.lt.s32.totalorder %s1535_s6, %s1535_s6 }
 0x152   :  { %756 = vmatprep.subr.bf16.mxu0 %v1364_v23  ;;  %v303_v30 = vpop.f32.mrb[7].mxu1  ;;  %v307_v59 = vmax.f32 %v299_v56, 0.0 }
 0x153   :  { %v308_v31 = vmax.f32 %v301_v27, 0.0  ;;  %p1542_p1 = por %p1541_p0, %p1540_p13 }
 0x154   :  { %v311_v60 = vpack.c.bf16 %v307_v59, %v307_v59 }
 0x155   :  { %757 = vmatpush1.bf16.msra.mxu0 %v1362_v26  ;;  %v312_v33 = vpack.c.bf16 %v308_v31, %v308_v31  ;;  %p1543_p2 = pnand %p1542_p1, %p1536_p12 }
 0x156   :  { %758 = vmatprep.subr.bf16.mxu0 %v1367_v29 }
 0x157   :  { %782 = vmatprep.mubr.bf16.mxu0 %v312_v33 }
 0x159   :  { %759 = vmatpush1.bf16.msra.mxu0 %v1365_v32  ;;  %v1200_v32 = vld [vmem:[%s1757_s8] ss:$0 sm:$0xff] }
 0x15a   :  { %760 = vmatprep.subr.bf16.mxu0 %v1370_v34 }
 0x15d   :  { %761 = vmatpush1.bf16.msra.mxu0 %v1368_v35 }
 0x15e   :  { %762 = vmatprep.subr.bf16.mxu0 %v1373_v36 }
 0x161   :  { %763 = vmatpush1.bf16.msra.mxu0 %v1371_v37 }
 0x162   :  { %764 = vmatprep.subr.bf16.mxu0 %v1376_v38 }
 0x165   :  { %765 = vmatpush1.bf16.msra.mxu0 %v1374_v39 }
 0x166   :  { %766 = vmatprep.subr.bf16.mxu0 %v1379_v40 }
 0x169   :  { %767 = vmatpush1.bf16.msra.mxu0 %v1377_v41 }
 0x16a   :  { %768 = vmatprep.subr.bf16.mxu0 %v1382_v42 }
 0x16d   :  { %769 = vmatpush1.bf16.msra.mxu0 %v1380_v43 }
 0x16e   :  { %770 = vmatprep.subr.bf16.mxu0 %v1385_v44 }
 0x171   :  { %771 = vmatpush1.bf16.msra.mxu0 %v1383_v45 }
 0x172   :  { %772 = vmatprep.subr.bf16.mxu0 %v1388_v46 }
 0x175   :  { %773 = vmatpush1.bf16.msra.mxu0 %v1386_v47 }
 0x176   :  { %774 = vmatprep.subr.bf16.mxu0 %v1391_v48 }
 0x179   :  { %775 = vmatpush1.bf16.msra.mxu0 %v1389_v49 }
 0x17a   :  { %776 = vmatprep.subr.bf16.mxu0 %v1394_v51 }
 0x17d   :  { %777 = vmatpush1.bf16.msra.mxu0 %v1392_v52 }
 0x17e   :  { %778 = vmatprep.subr.bf16.mxu0 %v1397_v54 }
 0x181   :  { %779 = vmatpush1.bf16.msra.mxu0 %v1395_v55 }
 0x182   :  { %780 = vmatprep.subr.bf16.mxu0 %v1400_v57 }
 0x185   :  { %781 = vmatpush1.bf16.msra.mxu0 %v1398_v58 }
 0x188   :  { %783 = vmatmul.mubr.bf16.vlgmr.msra.gmra.mrb[0].mxu0 %v311_v60 }
 0x25b   :  { %v784_v8 = vpop.f32.mrb[0].mxu0 }
 0x25c   :  { %v1260_v9 = vadd.f32 %v784_v8, %v382_v6  ;;  %v786_v10 = vpop.f32.mrb[1].mxu0 }
 0x25d   :  { %v1261_v11 = vadd.f32 %v786_v10, %v386_v7  ;;  %v788_v12 = vpop.f32.mrb[2].mxu0 }
 0x25e   :  { %v791_v13 = vmax.f32 %v1260_v9, 0.0  ;;  %v789_v14 = vpop.f32.mrb[3].mxu0 }
 0x25f   :  { %v792_v15 = vmax.f32 %v1261_v11, 0.0 }
 0x260   :  { %v793_v18 = vpack.c.bf16 %v791_v13, %v791_v13 }
 0x261   :  { %v794_v16 = vpack.c.bf16 %v792_v15, %v792_v15 }
 0x263   :  { %962 = vmatprep.mubr.bf16.mxu1 %v794_v16 }
 0x264   :  { %963 = vmatmul.mubr.bf16.vlgmr.msra.gmra.mrb[8].mxu1 %v793_v18 }
 0x265   :  { %1241 = vmatpush3.bf16.msra.mxu1 %v1417_v17  ;;  %1256 = vmatprep.mubr.msk.bf16.mxu1 %vm1578_vm1, %v1577_v4 }
 0x266   :  { %1242 = vmatprep.subr.bf16.mxu1 %v1577_v4 }
 0x269   :  { %1243 = vmatpush3.bf16.msra.mxu1 %v1418_v19 }
 0x26a   :  { %1244 = vmatprep.subr.bf16.mxu1 %v1577_v4 }
 0x26d   :  { %1245 = vmatpush3.bf16.msra.mxu1 %v1419_v1 }
 0x26e   :  { %1246 = vmatprep.subr.bf16.mxu1 %v1577_v4 }
 0x271   :  { %1247 = vmatpush3.bf16.msra.mxu1 %v1420_v0 }
 0x272   :  { %1248 = vmatprep.subr.bf16.mxu1 %v1577_v4 }
 0x275   :  { %1249 = vmatpush3.bf16.msra.mxu1 %v1421_v3 }
 0x276   :  { %1250 = vmatprep.subr.bf16.mxu1 %v1577_v4 }
 0x279   :  { %1251 = vmatpush3.bf16.msra.mxu1 %v1422_v20 }
 0x27a   :  { %1252 = vmatprep.subr.bf16.mxu1 %v1577_v4 }
 0x27d   :  { %1253 = vmatpush3.bf16.msra.mxu1 %v1423_v21 }
 0x27e   :  { %1254 = vmatprep.subr.bf16.mxu1 %v1577_v4 }
 0x281   :  { %1255 = vmatpush3.bf16.msra.mxu1 %v1424_v22 }
 0x337   :  { %v1225_v23 = vpop.f32.mrb[8].mxu1 }
 0x338   :  { %v1226_v25 = vpop.f32.mrb[9].mxu1 }
 0x339   :  { %v1227_v26 = vadd.f32 %v1226_v25, %v1225_v23  ;;  %v1228_v27 = vpop.f32.mrb[10].mxu1 }
 0x33a   :  { %v1229_v28 = vpop.f32.mrb[11].mxu1 }
 0x33b   :  { %v965_v29 = vadd.f32 %v1227_v26, %v1183_v24 }
 0x33d   :  { %v970_v30 = vmax.f32 %v965_v29, 0.0 }
 0x33f   :  { %v971_v31 = vpack.c.bf16 %v970_v30, %v970_v30 }
 0x341   :  { %1257 = vmatmul.mubr.bf16.vlgmr.msra.gmra.mrb[12].mxu1 %v971_v31 }
 0x414   :  { %v1077_v33 = vpop.f32.mrb[12].mxu1 }
 0x415   :  { %v1078_v34 = vadd.f32 %v1200_v32, %v1077_v33  ;;  %v1258_v35 = vpop.f32.mrb[13].mxu1 }
 0x416   :  { %v1080_v36 = vpop.f32.mrb[14].mxu1 }
 0x417   :  { %1083 = vst [vmem:[#allocation11] sm:$0xff] %v1078_v34  ;;  %v1259_v37 = vpop.f32.mrb[15].mxu1 }
 0x418   :  { %1546 = shalt.err (!%p1543_p2)
}
 0x419   :  { %s1547_s8 = scalar_lea.hbm %s1758_s9, 128 }
 0x41a   :  { %p1548_p3 = scmp.ne.s32.totalorder %s1758_s9, %s1547_s8  ;;  %p1551_p4 = scmp.lt.u32.totalorder %s1547_s8, %s1758_s9 }
 0x41c   :  { %p1553_p5 = pnand %p1551_p4, %p1548_p3 }
 0x41e   :  { %1556 = shalt.err (!%p1553_p5)
}
 0x41f   :  { %1093 = dma.vmem_to_hbm [thread:$0]  %s1091_s13, 128, %s1758_s9, [#allocation4]  }
 0x420   :  { %1563 = dma.done.wait [#allocation4], 128  }
 0x421   :  { %1564 = vsyncadd [#allocation4], 4294967168 }
 0x422   :  { %1097 = vsyncpa [#allocation3], 1 }
 0x423   :  { %1098 = vsyncpa [#allocation6], 1 }
 0x424   :  { %1099 = vsyncpa [#allocation9], 1 }
 0x425   :  { %1100 = vsyncpa [#allocation4], 1 }

</bundles_post_ra>
